<compile_context>
chip_gen: v7x
topology: tpu7x:2x2x1
jax: 0.10.0
libtpu: 0.0.40
codegen_flags: <defaults>
</compile_context>

<pallas_src>
import numpy as np
import jax
import jax.numpy as jnp
from jax.experimental import pallas as pl
from jax.experimental.pallas import tpu as pltpu


def _transition_kernel(x_ref, w_ref, b_ref, o_ref):
    # x_ref: (1, 2, 2, Cin, s_blk) -- the four 2x2 pool taps as separate major
    #        dims; Cin on sublanes, flattened pooled-pixel index on lanes.
    # w_ref: (Cout, Cin)  conv weight, pre-scaled by 0.25, compute dtype.
    # b_ref: (Cout, 1)    f32 bias (added after pooling; rows of pool sum to 1).
    # o_ref: (1, Cout, s_blk)
    # 2x2/s2 pooling sum on the VPU (kernel is DMA-bound -> VPU slack).
    xsum = (x_ref[0, 0, 0] + x_ref[0, 0, 1]) + (x_ref[0, 1, 0] + x_ref[0, 1, 1])
    # 1x1 conv on pooled pixels: one MXU matmul, f32 accumulation. The 0.25
    # average is already folded into w, so only the bias add remains.
    acc = jnp.dot(w_ref[...], xsum, preferred_element_type=jnp.float32)
    o_ref[0] = (acc + b_ref[...]).astype(o_ref.dtype)


def _pick_spatial_block(S, Cin, itemsize, target_bytes):
    """Lane-dense tiling of the flattened pooled-pixel axis.

    Returns (s_blk, S_pad, n_blocks) with s_blk either == S (single block,
    no 128 constraint needed) or a multiple of 128 bounded by target_bytes.
    """
    bytes_per_pooled_pixel = 4 * Cin * itemsize      # four taps per pooled pixel
    max_elems = max(target_bytes // bytes_per_pooled_pixel, 128)
    if S <= max_elems:
        return S, S, 1                               # whole image in one block
    s_blk = max((max_elems // 128) * 128, 128)       # multiple of 128 -> lane-dense
    n_sb = pl.cdiv(S, s_blk)
    return s_blk, n_sb * s_blk, n_sb


def transition_layer(x_nchw, weight, bias, *, compute_dtype=None,
                     target_block_bytes=8 * 1024 * 1024,
                     vmem_limit_bytes=48 * 1024 * 1024):
    """x_nchw: (N, Cin, H, W); weight: (Cout, Cin) or (Cout, Cin, 1, 1); bias: (Cout,)."""
    N, Cin, H, W = x_nchw.shape
    if weight.ndim == 4:
        weight = weight.reshape(weight.shape[0], weight.shape[1])
    Cout = weight.shape[0]
    assert H % 2 == 0 and W % 2 == 0
    H2, W2 = H // 2, W // 2
    S = H2 * W2
    if compute_dtype is None:
        compute_dtype = x_nchw.dtype
    compute_dtype = jnp.dtype(compute_dtype)

    s_blk, S_pad, n_sb = _pick_spatial_block(
        S, Cin, compute_dtype.itemsize, target_block_bytes)

    # NCHW -> (N, 2, 2, Cin, H2*W2): split each 2x2 pooling window into its
    # four taps.  The cast to the compute dtype is fused into this single
    # materialized copy so both the transpose write and the kernel's x DMA are
    # half-size on the bf16 path.
    x_r = x_nchw.reshape(N, Cin, H2, 2, W2, 2).astype(compute_dtype)
    x_in = jnp.transpose(x_r, (0, 3, 5, 1, 2, 4)).reshape(N, 2, 2, Cin, S)
    if S_pad != S:
        x_in = jnp.pad(x_in, ((0, 0), (0, 0), (0, 0), (0, 0), (0, S_pad - S)))

    # Fold the 0.25 average into the weight (power-of-two scale: exact in f32)
    # and pre-cast it, so the kernel body has no per-step casts.
    w = (weight.astype(jnp.float32) * 0.25).astype(compute_dtype)
    b = bias.reshape(Cout, 1).astype(jnp.float32)

    out = pl.pallas_call(
        _transition_kernel,
        out_shape=jax.ShapeDtypeStruct((N, Cout, S_pad), x_nchw.dtype),
        grid_spec=pltpu.PrefetchScalarGridSpec(
            num_scalar_prefetch=0,
            grid=(N, n_sb),
            in_specs=[
                pl.BlockSpec((1, 2, 2, Cin, s_blk), lambda n, s: (n, 0, 0, 0, s)),
                pl.BlockSpec((Cout, Cin), lambda n, s: (0, 0)),
                pl.BlockSpec((Cout, 1), lambda n, s: (0, 0)),
            ],
            out_specs=pl.BlockSpec((1, Cout, s_blk), lambda n, s: (n, 0, s)),
        ),
        compiler_params=pltpu.CompilerParams(
            dimension_semantics=("parallel", "parallel"),
            vmem_limit_bytes=vmem_limit_bytes,
        ),
    )(x_in, w, b)

    if S_pad != S:
        out = out[..., :S]
    # (N, Cout, H2*W2) -> (N, Cout, H/2, W/2): free row-major reshape (NCHW out).
    return out.reshape(N, Cout, H2, W2)


def _reference(x_nchw, weight, bias):
    # Pure-JAX reference: 1x1 conv (+bias) then 2x2/s2 avg pool (PyTorch semantics).
    y = jnp.einsum("nchw,oc->nohw", x_nchw, weight) + bias[None, :, None, None]
    N, Co, H, W = y.shape
    y = y.reshape(N, Co, H // 2, 2, W // 2, 2)
    return y.mean(axis=(3, 5))


if __name__ == "__main__":
    key = jax.random.PRNGKey(0)
    k1, k2, k3 = jax.random.split(key, 3)

    N, Cin, Cout, H, W = 2, 4, 2, 16, 16
    x = jax.random.normal(k1, (N, Cin, H, W), dtype=jnp.float32)
    # Deterministic synthetic Conv2d(1x1) parameters (shapes match nn.Conv2d).
    weight = jax.random.normal(k2, (Cout, Cin), dtype=jnp.float32) * 0.1
    bias = jax.random.normal(k3, (Cout,), dtype=jnp.float32) * 0.1

    ref = _reference(x, weight, bias)

    # f32 path (tight numerical check).
    out = jax.block_until_ready(transition_layer(x, weight, bias))
    np.testing.assert_allclose(np.asarray(out), np.asarray(ref),
                               rtol=1e-5, atol=1e-5)

    # bf16 feed path (recommended on v6e/v7x): bf16 x/w from HBM, f32 accum+bias.
    out_bf16 = jax.block_until_ready(
        transition_layer(x, weight, bias, compute_dtype=jnp.bfloat16))
    np.testing.assert_allclose(np.asarray(out_bf16), np.asarray(ref),
                               rtol=3e-2, atol=3e-2)

    print("KERNEL_OK")
</pallas_src>

<mosaic_0001>
module attributes {stable_mosaic.version = 11 : i64} {
  func.func @_transition_kernel(%arg0: i32, %arg1: i32, %arg2: memref<1x2x2x4x64xf32, #tpu.memory_space<vmem>>, %arg3: memref<2x4xf32, #tpu.memory_space<vmem>>, %arg4: memref<2x1xf32, #tpu.memory_space<vmem>>, %arg5: memref<1x2x64xf32, #tpu.memory_space<vmem>>) attributes {dimension_semantics = [#tpu.dimension_semantics<parallel>, #tpu.dimension_semantics<parallel>], iteration_bounds = array<i64: 2, 1>, scalar_prefetch = 0 : i64, scratch_operands = 0 : i64, tpu.core_type = #tpu.core_type<tc>, window_params = [{transform_indices = @transform_0, window_bounds = array<i64: 1, 2, 2, 4, 64>}, {pipeline_mode = #tpu.pipeline_mode<synchronous>, transform_indices = @transform_1, window_bounds = array<i64: 2, 4>}, {pipeline_mode = #tpu.pipeline_mode<synchronous>, transform_indices = @transform_2, window_bounds = array<i64: 2, 1>}, {transform_indices = @transform_3, window_bounds = array<i64: 1, 2, 64>}]} {
    %c0 = arith.constant 0 : index
    %c0_0 = arith.constant 0 : index
    %c0_1 = arith.constant 0 : index
    %c0_2 = arith.constant 0 : index
    %c0_3 = arith.constant 0 : index
    %0 = vector.load %arg2[%c0, %c0_0, %c0_1, %c0_2, %c0_3] : memref<1x2x2x4x64xf32, #tpu.memory_space<vmem>>, vector<1x1x1x4x64xf32>
    %1 = vector.shape_cast %0 : vector<1x1x1x4x64xf32> to vector<4x64xf32>
    %c0_4 = arith.constant 0 : index
    %c0_5 = arith.constant 0 : index
    %c1 = arith.constant 1 : index
    %c0_6 = arith.constant 0 : index
    %c0_7 = arith.constant 0 : index
    %2 = vector.load %arg2[%c0_4, %c0_5, %c1, %c0_6, %c0_7] : memref<1x2x2x4x64xf32, #tpu.memory_space<vmem>>, vector<1x1x1x4x64xf32>
    %3 = vector.shape_cast %2 : vector<1x1x1x4x64xf32> to vector<4x64xf32>
    %4 = arith.addf %1, %3 : vector<4x64xf32>
    %c0_8 = arith.constant 0 : index
    %c1_9 = arith.constant 1 : index
    %c0_10 = arith.constant 0 : index
    %c0_11 = arith.constant 0 : index
    %c0_12 = arith.constant 0 : index
    %5 = vector.load %arg2[%c0_8, %c1_9, %c0_10, %c0_11, %c0_12] : memref<1x2x2x4x64xf32, #tpu.memory_space<vmem>>, vector<1x1x1x4x64xf32>
    %6 = vector.shape_cast %5 : vector<1x1x1x4x64xf32> to vector<4x64xf32>
    %c0_13 = arith.constant 0 : index
    %c1_14 = arith.constant 1 : index
    %c1_15 = arith.constant 1 : index
    %c0_16 = arith.constant 0 : index
    %c0_17 = arith.constant 0 : index
    %7 = vector.load %arg2[%c0_13, %c1_14, %c1_15, %c0_16, %c0_17] : memref<1x2x2x4x64xf32, #tpu.memory_space<vmem>>, vector<1x1x1x4x64xf32>
    %8 = vector.shape_cast %7 : vector<1x1x1x4x64xf32> to vector<4x64xf32>
    %9 = arith.addf %6, %8 : vector<4x64xf32>
    %10 = arith.addf %4, %9 : vector<4x64xf32>
    %c0_18 = arith.constant 0 : index
    %c0_19 = arith.constant 0 : index
    %11 = vector.load %arg3[%c0_18, %c0_19] : memref<2x4xf32, #tpu.memory_space<vmem>>, vector<2x4xf32>
    %cst = arith.constant dense<0.000000e+00> : vector<2x64xf32>
    %12 = tpu.matmul %11, %10, %cst {dimension_numbers = #tpu.dot_dimension_numbers<[1], [0], [0], [1], [0, 0, 1, 1], [], []>} : vector<2x4xf32>, vector<4x64xf32>, vector<2x64xf32> -> vector<2x64xf32>
    %c0_20 = arith.constant 0 : index
    %c0_21 = arith.constant 0 : index
    %13 = vector.load %arg4[%c0_20, %c0_21] : memref<2x1xf32, #tpu.memory_space<vmem>>, vector<2x1xf32>
    %14 = vector.broadcast %13 : vector<2x1xf32> to vector<2x64xf32>
    %15 = arith.addf %12, %14 : vector<2x64xf32>
    %c0_22 = arith.constant 0 : index
    %c0_23 = arith.constant 0 : index
    %c0_24 = arith.constant 0 : index
    %16 = vector.load %arg5[%c0_22, %c0_23, %c0_24] : memref<1x2x64xf32, #tpu.memory_space<vmem>>, vector<1x2x64xf32>
    %17 = vector.shape_cast %16 : vector<1x2x64xf32> to vector<2x64xf32>
    %18 = vector.shape_cast %15 : vector<2x64xf32> to vector<1x2x64xf32>
    tpu.vector_store %arg5[%c0_22, %c0_23, %c0_24], %18 {strides = array<i32>} : memref<1x2x64xf32, #tpu.memory_space<vmem>>, vector<1x2x64xf32>,
    return
  }
  func.func @transform_0(%arg0: i32, %arg1: i32) -> (i32, i32, i32, i32, i32) {
    %c0_i32 = arith.constant 0 : i32
    %c0_i32_0 = arith.constant 0 : i32
    %c0_i32_1 = arith.constant 0 : i32
    %c0_i32_2 = arith.constant 0 : i32
    return %arg0, %c0_i32, %c0_i32_0, %c0_i32_1, %arg1 : i32, i32, i32, i32, i32
  }
  func.func @transform_1(%arg0: i32, %arg1: i32) -> (i32, i32) {
    %c0_i32 = arith.constant 0 : i32
    %c0_i32_0 = arith.constant 0 : i32
    %c0_i32_1 = arith.constant 0 : i32
    return %c0_i32, %c0_i32_0 : i32, i32
  }
  func.func @transform_2(%arg0: i32, %arg1: i32) -> (i32, i32) {
    %c0_i32 = arith.constant 0 : i32
    %c0_i32_0 = arith.constant 0 : i32
    %c0_i32_1 = arith.constant 0 : i32
    return %c0_i32, %c0_i32_0 : i32, i32
  }
  func.func @transform_3(%arg0: i32, %arg1: i32) -> (i32, i32, i32) {
    %c0_i32 = arith.constant 0 : i32
    %c0_i32_0 = arith.constant 0 : i32
    return %arg0, %c0_i32, %arg1 : i32, i32, i32
  }
}

</mosaic_0001>

<bundles_post_ra>
// kernel: tpu_custom_call.1
= control target key start
LH: loop header
LB: loop body
LE: loop exit
PB: predicated region body
PF: predicated region fallthrough
CT: control target
= control target key end

     0   :  { %8 = vsyncpa [#allocation3], 0  ;;  %s815_s0 = inlined_call_operand.hbm [shape: f32[2,2,2,4,64], index: 0, kind: input, shape index: {}]   ;;  %s816_s1 = inlined_call_operand.vmem [shape: f32[2,4], index: 1, kind: input, shape index: {}]   ;;  %s817_s2 = inlined_call_operand.vmem [shape: f32[2,1], index: 2, kind: input, shape index: {}]   ;;  %s818_s3 = inlined_call_operand.hbm [shape: f32[2,2,64], index: 3, kind: output, shape index: {}]  }
   0x1   :  { %10 = vsyncpa [#allocation3 + $0x1], 0 }
   0x2   :  { %11 = vsyncpa [#allocation4], 0 }
   0x3   :  { %13 = vsyncpa [#allocation4 + $0x1], 0  ;;  %s635_s12 = smov 0   ;;  %s637_s13 = smov 0  }
   0x4   :  { %s639_s14 = smov 0   ;;  %s641_s15 = smov 0  }
   0x5   :  { %s643_s16 = smov 0   ;;  %s645_s17 = smov 0  }
   0x6 LB: > { %s399_s18 = sadd.s32 4294967295, %s606_s17   ;;  %s400_s19 = sadd.s32 4294967294, %s606_s17   ;;  %s606_s17 = sphi %s645_s17, %s19_s17   ;;  %s602_s16 = sphi %s643_s16, %s833_s16   ;;  %s598_s15 = sphi %s641_s15, %s832_s15   ;;  %s594_s14 = sphi %s639_s14, %s831_s14   ;;  %s590_s13 = sphi %s637_s13, %s830_s13   ;;  %s586_s12 = sphi %s635_s12, %s829_s12  }
   0x7   : > { %s31_s20 = sadd.s32 1, %s602_s16  ;;  %s40_s21 = sadd.s32 1, %s594_s14 }
   0x8   : > { %p33_p0 = scmp.ge.s32.totalorder %s31_s20, 2  ;;  %p47_p1 = scmp.ne.s32.totalorder %s594_s14, %s590_s13 }
   0x9   : > { %p48_p2 = scmp.eq.s32.totalorder %s606_s17, 0  ;;  %p53_p3 = scmp.ne.s32.totalorder %s590_s13, %s586_s12 }
   0xa   : > { %s835_s20 = smov (%p33_p0, %s31_s20), 0  ;;  %p54_p5 = scmp.eq.s32.totalorder %s399_s18, 0 }
   0xb   : > { %p676_p4 = por %p48_p2, %p47_p1  ;;  %s35_s23 = ssub.s32 %s602_s16, %s835_s20 }
   0xc   : > { %p121_p6 = scmp.eq.s32.totalorder %s399_s18, 1  ;;  %p38_p7 = scmp.eq.s32.totalorder %s35_s23, 0 }
   0xd   : > { %p682_p8 = por %p54_p5, %p53_p3  ;;  %p127_p10 = scmp.eq.s32.totalorder %s400_s19, 1 }
   0xe   : > { %p686_p9 = por %p121_p6, %p47_p1  ;;  %p438_p13 = scmp.lt.s32.totalorder %s606_s17, 2 }
   0xf   : > { %s691_s26 = scalar_select %p38_p7, %s594_s14, %s40_s21  }
  0x10   : > { %s822_s25 = scalar_select %p686_p9, 1, 0 }
  0x11   : > { %p693_p11 = por %p127_p10, %p53_p3  ;;  %s153_s28 = sand.u32 1, %s594_s14  }
  0x12   : > { %s403_s29 = sshll.u32 %s153_s28, 4  ;;  %s418_s30 = sshll.u32 %s602_s16, 8 }
  0x13   : > { %s823_s27 = scalar_select %p693_p11, 1, 0 }
  0x14   : > { %s704_s6 = scalar_lea.hbm %s815_s0, %s418_s30  ;;  %s157_s7 = scalar_lea.vmem [#allocation2], %s403_s29 }
  0x15   : > { %s165_s8 = sshll.u32 %s157_s7, 4  ;;  %p710_p0 = pnand %p438_p13, %p676_p4  ;;  %s706_s8 = int_to_ptr.vmem [resolvable:$true] %s165_s8 }
  0x16   : > { %s715_s10 = scalar_lea.sflag [#allocation3], %s153_s28  ;;  %s494_s11 = scalar_lea.hbm %s704_s6, 256 }
  0x17   : > { %p495_p2 = scmp.ne.s32.totalorder %s704_s6, %s494_s11  ;;  %p496_p3 = pneg %p710_p0 }
  0x18   : > { %s499_s21 = scalar_lea.hbm %s815_s0, 512  ;;  %p500_p4 = scmp.lt.u32.totalorder %s704_s6, %s815_s0 }
  0x19   : > { %p497_p5 = pnand %p496_p3, %p495_p2  ;;  %p501_p7 = scmp.lt.u32.totalorder %s499_s21, %s494_s11 }
  0x1a   : > { %p503_p13 = scmp.lt.u32.totalorder %s494_s11, %s704_s6 }
  0x1b   : > { %p498_p6 = pneg %p497_p5  ;;  %p502_p10 = por %p501_p7, %p500_p4 }
  0x1d   : > { %p504_p12 = por %p503_p13, %p502_p10 }
  0x1f   : > { %p505_p1 = pnand %p504_p12, %p498_p6 }
  0x21   : > { %508 = shalt.err (!%p505_p1)
}
  0x22   : > { %s509_s28 = scalar_lea.vmem %s706_s8, 256  ;;  %s608_s29 = smov [#allocation2]  }
  0x23   : > { %p510_p2 = scmp.ne.s32.totalorder %s706_s8, %s509_s28  ;;  %s514_s30 = sshll.u32 %s608_s29, 4  ;;  %s515_s30 = int_to_ptr.vmem [resolvable:$false] %s514_s30 }
  0x24   : > { %s516_s4 = scalar_lea.vmem %s515_s30, 512  ;;  %p517_p9 = scmp.lt.s32.totalorder %s706_s8, %s515_s30 }
  0x25   : > { %p512_p5 = pnand %p510_p2, %p496_p3  ;;  %p518_p4 = scmp.lt.s32.totalorder %s516_s4, %s509_s28 }
  0x27   : > { %p513_p11 = pneg %p512_p5  ;;  %p519_p7 = por %p518_p4, %p517_p9 }
  0x29   : > { %p520_p10 = pnand %p519_p7, %p513_p11 }
  0x2b   : > { %523 = shalt.err (!%p520_p10)
}
  0x2c   : > { %s609_s5 = smov 64   ;;  %s610_s7 = smov 4  }
  0x2d   : > { %433 = dma.hbm_to_vmem [thread:$0]  (!%p710_p0), %s704_s6, 256, %s706_s8, %s715_s10, %s609_s5, %s609_s5, %s610_s7  }
  0x2e   : > { %p173_p12 = scmp.lt.s32.totalorder %s606_s17, 3  ;;  %p825_p1 = scmp.ge.s32.totalorder %s606_s17, 1 }
  0x30   : > { %p174_p3 = pnand %p825_p1, %p173_p12 }
  0x31   : > { %s747_s11 = sand.u32 (!%p174_p3), 1, %s590_s13  }
  0x32   : > { %177 = sbr.rel (%p174_p3) target bundleno = 293 (0x125), region = 32  ;;  %s407_s18 = sshll.u32 (!%p174_p3), %s747_s11, 4 }
  0x33   : > { %s180_s19 = scalar_lea.sflag (!%p174_p3), [#allocation3], %s747_s11  ;;  %s183_s21 = scalar_lea.vmem (!%p174_p3), [#allocation2], %s407_s18 }
  0x39   : > { %577 = dma.done.wait (%p682_p8), %s180_s19, 256  }
  0x3a   : > { %579 = vsyncadd (%p682_p8), %s180_s19, 4294967040  ;;  %v611_v0 = vmov 0.0   ;;  %vm612_vm0 = vmmov 0   ;;  %v613_v1 = vmov 0   ;;  %v206_v2 = vld [vmem:[%s183_s21] sm:$0xf] }
  0x3b   : > { %421 = vmatprep.subr.mxu0 %v611_v0  ;;  %423 = vmatprep.mubr.msk.f32.mxu0 %vm612_vm0, %v611_v0  ;;  %v409_v3 = vld [vmem:[%s183_s21 + $0x4] sm:$0xf]  ;;  %v410_v4 = vld [vmem:[%s183_s21 + $0x8] sm:$0xf]  ;;  %v411_v6 = vld [vmem:[%s183_s21 + $0xc] sm:$0xf] }
  0x3c   : > { %493 = vset.pattern.permute.xlu0 %v613_v1  ;;  %v209_v5 = vadd.f32 %v409_v3, %v206_v2  ;;  %v217_v7 = vld [vmem:[%s817_s2] sm:$0x3]  ;;  %v214_v8 = vadd.f32 %v411_v6, %v410_v4  ;;  %vm227_vm1 = vcmask 1043456   ;;  %vm223_vm2 = vcmask 31744   ;;  %s408_s10 = sshll.u32 %s747_s11, 1  ;;  %s415_s22 = sshll.u32 %s598_s15, 5 }
  0x3d   : > { %220 = vperm.xlu0 %493, %v217_v7   ;;  %v216_v10 = vld [vmem:[%s816_s1] sm:$0x3]  ;;  %s205_s23 = scalar_lea.vmem [#allocation5], %s408_s10  ;;  %vm301_vm3 = vcmask 517120   ;;  %s766_s4 = scalar_lea.hbm %s818_s3, %s415_s22 }
  0x3e   : > { %v215_v9 = vadd.f32 %v214_v8, %v209_v5  ;;  %s318_s28 = sshll.u32 %s205_s23, 4  ;;  %s304_s5 = scalar_lea.sflag [#allocation4], %s747_s11  ;;  %s768_s28 = int_to_ptr.vmem [resolvable:$true] %s318_s28 }
  0x3f   : > { %s524_s7 = scalar_lea.vmem %s768_s28, 32  ;;  %p826_p9 = scmp.ne.s32.totalorder %s822_s25, 0 }
  0x40   : > { %422 = vmatpush3.msk.msra.mxu0 %vm227_vm1, %v215_v9  ;;  %p525_p8 = scmp.ne.s32.totalorder %s768_s28, %s524_s7  ;;  %s614_s15 = smov [#allocation5]  }
  0x41   : > { %424 = vmatmul.mubr.msk.f32.vlgmr.msra.gmra.mrb[0].mxu0 %vm223_vm2, %v216_v10  ;;  %s528_s18 = sshll.u32 %s614_s15, 4  ;;  %s529_s18 = int_to_ptr.vmem [resolvable:$false] %s528_s18 }
  0x42   : > { %p526_p11 = pnand %p525_p8, %p826_p9  ;;  %s530_s19 = scalar_lea.vmem %s529_s18, 64 }
  0x43   : > { %p531_p6 = scmp.lt.s32.totalorder %s768_s28, %s529_s18  ;;  %p532_p13 = scmp.lt.s32.totalorder %s530_s19, %s524_s7 }
  0x44   : > { %p527_p0 = pneg %p526_p11 }
  0x45   : > { %p533_p2 = por %p532_p13, %p531_p6 }
  0x47   : > { %p534_p5 = pnand %p533_p2, %p527_p0 }
  0xbc   : > { %v221_v11 = vpop.permute.xlu0 %220 }
 0x114   : > { %v297_v12 = vpop.f32.mrb[0].mxu0 }
 0x115   : > { %v298_v13 = vadd.f32 %v297_v12, %v221_v11  ;;  %v425_v14 = vpop.f32.mrb[1].mxu0 }
 0x117   : > { %302 = vst.msk [vmem:[%s205_s23] sm:$0x3] %vm301_vm3, %v298_v13 }
 0x118   : > { %537 = shalt.err (!%p534_p5)
}
 0x119   : > { %s538_s11 = scalar_lea.hbm %s766_s4, 32  ;;  %s542_s8 = scalar_lea.hbm %s818_s3, 64 }
 0x11a   : > { %p539_p4 = scmp.ne.s32.totalorder %s766_s4, %s538_s11  ;;  %p543_p12 = scmp.lt.u32.totalorder %s766_s4, %s818_s3 }
 0x11b   : > { %p544_p1 = scmp.lt.u32.totalorder %s542_s8, %s538_s11  ;;  %p546_p8 = scmp.lt.u32.totalorder %s538_s11, %s766_s4 }
 0x11c   : > { %p540_p7 = pnand %p539_p4, %p826_p9 }
 0x11d   : > { %p545_p3 = por %p544_p1, %p543_p12 }
 0x11e   : > { %p541_p10 = pneg %p540_p7 }
 0x11f   : > { %p547_p11 = por %p546_p8, %p545_p3 }
 0x121   : > { %p548_p0 = pnand %p547_p11, %p541_p10 }
 0x123   : > { %551 = shalt.err (!%p548_p0)
}
 0x124   : > { %428 = dma.vmem_to_hbm [thread:$0]  (%p826_p9), %s768_s28, 32, %s766_s4, %s304_s5  }
 0x125 PF: > { %s330_s10 = sand.u32 1, %s586_s12   ;;  %p827_p6 = scmp.ne.s32.totalorder %s823_s27, 0 }
 0x126   : > { %p828_p13 = scmp.ge.s32.totalorder %s606_s17, 2  ;;  %s331_s22 = scalar_lea.sflag [#allocation4], %s330_s10 }
 0x128   : > { %p435_p2 = pnand %p828_p13, %p827_p6 }
 0x12a   : > { %581 = dma.done.wait (!%p435_p2), %s331_s22, 32  }
 0x12b   : > { %583 = vsyncadd (!%p435_p2), %s331_s22, 4294967264  ;;  %s19_s17 = sadd.s32 1, %s606_s17   ;;  %s829_s12 = smov %s590_s13 }
 0x12c   : > { %p16_p5 = scmp.ge.s32.totalorder %s19_s17, 4   ;;  %s830_s13 = smov %s594_s14 }
 0x12d   : > { %s831_s14 = smov %s691_s26  ;;  %s832_s15 = smov %s602_s16 }
 0x12e   : > { %s833_s16 = smov %s835_s20  ;;  %18 = sbr.rel (!%p16_p5) target bundleno = 6 (0x6), region = 80 }
 0x135   :  { %336 = vsyncpa [#allocation3], 1 }
 0x136   :  { %338 = vsyncpa [#allocation3 + $0x1], 1 }
 0x137   :  { %339 = vsyncpa [#allocation4], 1 }
 0x138   :  { %341 = vsyncpa [#allocation4 + $0x1], 1 }

</bundles_post_ra>
